<compile_context>
chip_gen: v5e
topology: v5e:2x2
jax: 0.10.0
libtpu: 0.0.40
codegen_flags: <defaults>
</compile_context>

<pallas_src>
import jax
import jax.numpy as jnp
from jax import lax
from jax.experimental import pallas as pl
from jax.experimental.pallas import tpu as pltpu

STATE_DIM = 288
ACT_DIM = 12
HIDDEN = 256
OUT_DIM = 288


def _round_up(x, m):
    return ((x + m - 1) // m) * m


def fnet_kernel(act_ref, state_ref, w1s_ref, w1a_ref, b1_ref, w2_ref, b2_ref, o_ref):
    # act:   [TILE_B, 1]  int32      state: [TILE_B, 288]
    # w1s:   [288, 256]   w1a: [12, 256]   b1: [1, 256]   (biases always f32)
    # w2:    [256, 288]   b2: [1, 288]     out: [TILE_B, 288]
    wdt = w1s_ref.dtype
    state = state_ref[...]
    tile_b = state.shape[0]

    # In-kernel one-hot of the action (replaces torch's scatter + concat).
    lanes = lax.broadcasted_iota(jnp.int32, (tile_b, ACT_DIM), 1)
    onehot = (act_ref[...] == lanes).astype(wdt)                     # [TILE_B, 12]

    # Layer 1: split contraction  state@W1s + onehot@W1a + b1, ReLU in f32.
    h = jnp.dot(state.astype(wdt), w1s_ref[...], preferred_element_type=jnp.float32)
    h = h + jnp.dot(onehot, w1a_ref[...], preferred_element_type=jnp.float32)
    h = h + b1_ref[...].astype(jnp.float32)
    h = jnp.maximum(h, 0.0)

    # Layer 2.
    y = jnp.dot(h.astype(wdt), w2_ref[...], preferred_element_type=jnp.float32)
    y = y + b2_ref[...].astype(jnp.float32)
    o_ref[...] = y.astype(o_ref.dtype)


def fnet_forward(state, action, params):
    """state: [B, 288] f32, action: [B] or [B,1] int, params from init_fnet_params."""
    w1_state, w1_act, b1, w2, b2 = params
    B = state.shape[0]
    a = action.reshape(B, 1).astype(jnp.int32)

    # Tile the batch: 256-row M tiles for large B (fills v6e/v7x MXU, multiple
    # of 128 for v5e); for small B pad to a multiple of 8 sublanes, one tile.
    b_pad = _round_up(B, 8)
    tile_b = min(256, b_pad)
    b_pad = _round_up(b_pad, tile_b)
    if b_pad != B:
        state = jnp.pad(state, ((0, b_pad - B), (0, 0)))
        a = jnp.pad(a, ((0, b_pad - B), (0, 0)))

    grid = (b_pad // tile_b,)

    out = pl.pallas_call(
        fnet_kernel,
        out_shape=jax.ShapeDtypeStruct((b_pad, OUT_DIM), state.dtype),
        grid=grid,
        in_specs=[
            pl.BlockSpec((tile_b, 1), lambda i: (i, 0)),           # action ids
            pl.BlockSpec((tile_b, STATE_DIM), lambda i: (i, 0)),   # state tile
            pl.BlockSpec((STATE_DIM, HIDDEN), lambda i: (0, 0)),   # w1_state (resident)
            pl.BlockSpec((ACT_DIM, HIDDEN), lambda i: (0, 0)),     # w1_act   (resident)
            pl.BlockSpec((1, HIDDEN), lambda i: (0, 0)),           # b1       (resident)
            pl.BlockSpec((HIDDEN, OUT_DIM), lambda i: (0, 0)),     # w2       (resident)
            pl.BlockSpec((1, OUT_DIM), lambda i: (0, 0)),          # b2       (resident)
        ],
        out_specs=pl.BlockSpec((tile_b, OUT_DIM), lambda i: (i, 0)),
        compiler_params=pltpu.CompilerParams(
            dimension_semantics=("parallel",)),
    )(a, state, w1_state, w1_act, b1, w2, b2)
    return out[:B]


def init_fnet_params(key, weight_dtype=jnp.float32):
    """nn.Linear-style init (U[-1/sqrt(fan_in), 1/sqrt(fan_in)]).
    W1 is stored split: rows [:288] multiply the state, rows [288:300] the one-hot.
    Biases are kept in f32 (elementwise math stays f32 in the kernel)."""
    k1, k2, k3, k4 = jax.random.split(key, 4)
    lim1 = 1.0 / jnp.sqrt(300.0)
    lim2 = 1.0 / jnp.sqrt(256.0)
    w1 = jax.random.uniform(k1, (STATE_DIM + ACT_DIM, HIDDEN), jnp.float32, -lim1, lim1)
    b1 = jax.random.uniform(k2, (1, HIDDEN), jnp.float32, -lim1, lim1)
    w2 = jax.random.uniform(k3, (HIDDEN, OUT_DIM), jnp.float32, -lim2, lim2)
    b2 = jax.random.uniform(k4, (1, OUT_DIM), jnp.float32, -lim2, lim2)
    return (w1[:STATE_DIM].astype(weight_dtype),
            w1[STATE_DIM:].astype(weight_dtype),
            b1,
            w2.astype(weight_dtype),
            b2)


def fnet_reference(state, action, params):
    """Pure-JAX reference with the original torch structure (one-hot + concat)."""
    w1_state, w1_act, b1, w2, b2 = params
    B = state.shape[0]
    onehot = jax.nn.one_hot(action.reshape(B), ACT_DIM, dtype=jnp.float32)
    x = jnp.concatenate([state, onehot], axis=1)
    w1 = jnp.concatenate([w1_state, w1_act], axis=0).astype(jnp.float32)
    h = jnp.maximum(x @ w1 + b1, 0.0)
    return h @ w2.astype(jnp.float32) + b2


if __name__ == "__main__":
    key = jax.random.PRNGKey(0)
    k_param, k_state, k_action = jax.random.split(key, 3)

    # Small-batch case (matches the original module usage).
    B = 8
    state = jax.random.normal(k_state, (B, STATE_DIM), dtype=jnp.float32)
    action = jax.random.randint(k_action, (B, 1), 0, ACT_DIM, dtype=jnp.int32)

    # f32 weights: tight check against the torch-equivalent reference.
    params_f32 = init_fnet_params(k_param, jnp.float32)
    y = fnet_forward(state, action, params_f32)
    jax.block_until_ready(y)
    assert y.shape == (B, OUT_DIM), y.shape
    ref = fnet_reference(state, action, params_f32)
    assert jnp.allclose(y, ref, atol=2e-5, rtol=2e-5)

    # bf16 weights (MXU fast path, f32 accumulate): relaxed tolerance.
    params_bf16 = init_fnet_params(k_param, jnp.bfloat16)
    y16 = fnet_forward(state, action, params_bf16)
    jax.block_until_ready(y16)
    ref16 = fnet_reference(state, action, params_bf16)
    assert jnp.allclose(y16, ref16, atol=5e-2, rtol=5e-2)

    # Larger batch: exercises the multi-tile grid + batch padding path.
    B2 = 300
    k_s2, k_a2 = jax.random.split(k_state)
    state2 = jax.random.normal(k_s2, (B2, STATE_DIM), dtype=jnp.float32)
    action2 = jax.random.randint(k_a2, (B2,), 0, ACT_DIM, dtype=jnp.int32)
    y2 = fnet_forward(state2, action2, params_f32)
    jax.block_until_ready(y2)
    assert y2.shape == (B2, OUT_DIM), y2.shape
    ref2 = fnet_reference(state2, action2, params_f32)
    assert jnp.allclose(y2, ref2, atol=2e-5, rtol=2e-5)

    # NOTE: at B~8 the op is launch/DMA-latency bound; batch multiple env steps
    # into one call (as the B=300 path shows) before expecting MXU utilization.
    print("KERNEL_OK")
</pallas_src>

<mosaic_0001>
module attributes {stable_mosaic.version = 11 : i64} {
  func.func @fnet_kernel(%arg0: i32, %arg1: memref<8x1xi32, #tpu.memory_space<vmem>>, %arg2: memref<8x288xf32, #tpu.memory_space<vmem>>, %arg3: memref<288x256xf32, #tpu.memory_space<vmem>>, %arg4: memref<12x256xf32, #tpu.memory_space<vmem>>, %arg5: memref<1x256xf32, #tpu.memory_space<vmem>>, %arg6: memref<256x288xf32, #tpu.memory_space<vmem>>, %arg7: memref<1x288xf32, #tpu.memory_space<vmem>>, %arg8: memref<8x288xf32, #tpu.memory_space<vmem>>) attributes {dimension_semantics = [#tpu.dimension_semantics<parallel>], iteration_bounds = array<i64: 1>, scalar_prefetch = 0 : i64, scratch_operands = 0 : i64, tpu.core_type = #tpu.core_type<tc>, window_params = [{transform_indices = @transform_0, window_bounds = array<i64: 8, 1>}, {transform_indices = @transform_1, window_bounds = array<i64: 8, 288>}, {pipeline_mode = #tpu.pipeline_mode<synchronous>, transform_indices = @transform_2, window_bounds = array<i64: 288, 256>}, {pipeline_mode = #tpu.pipeline_mode<synchronous>, transform_indices = @transform_3, window_bounds = array<i64: 12, 256>}, {pipeline_mode = #tpu.pipeline_mode<synchronous>, transform_indices = @transform_4, window_bounds = array<i64: 1, 256>}, {pipeline_mode = #tpu.pipeline_mode<synchronous>, transform_indices = @transform_5, window_bounds = array<i64: 256, 288>}, {pipeline_mode = #tpu.pipeline_mode<synchronous>, transform_indices = @transform_6, window_bounds = array<i64: 1, 288>}, {transform_indices = @transform_7, window_bounds = array<i64: 8, 288>}]} {
    %c0 = arith.constant 0 : index
    %c0_0 = arith.constant 0 : index
    %0 = vector.load %arg2[%c0, %c0_0] : memref<8x288xf32, #tpu.memory_space<vmem>>, vector<8x288xf32>
    %1 = tpu.iota {dimensions = array<i32: 1>} : vector<8x12xi32>
    %c0_1 = arith.constant 0 : index
    %c0_2 = arith.constant 0 : index
    %2 = vector.load %arg1[%c0_1, %c0_2] : memref<8x1xi32, #tpu.memory_space<vmem>>, vector<8x1xi32>
    %3 = vector.broadcast %2 : vector<8x1xi32> to vector<8x12xi32>
    %4 = arith.cmpi eq, %3, %1 : vector<8x12xi32>
    %5 = arith.extui %4 : vector<8x12xi1> to vector<8x12xi32>
    %6 = arith.sitofp %5 : vector<8x12xi32> to vector<8x12xf32>
    %c0_3 = arith.constant 0 : index
    %c0_4 = arith.constant 0 : index
    %7 = vector.load %arg3[%c0_3, %c0_4] : memref<288x256xf32, #tpu.memory_space<vmem>>, vector<288x256xf32>
    %cst = arith.constant dense<0.000000e+00> : vector<8x256xf32>
    %8 = tpu.matmul %0, %7, %cst {dimension_numbers = #tpu.dot_dimension_numbers<[1], [0], [0], [1], [0, 0, 1, 1], [], []>} : vector<8x288xf32>, vector<288x256xf32>, vector<8x256xf32> -> vector<8x256xf32>
    %c0_5 = arith.constant 0 : index
    %c0_6 = arith.constant 0 : index
    %9 = vector.load %arg4[%c0_5, %c0_6] : memref<12x256xf32, #tpu.memory_space<vmem>>, vector<12x256xf32>
    %cst_7 = arith.constant dense<0.000000e+00> : vector<8x256xf32>
    %10 = tpu.matmul %6, %9, %cst_7 {dimension_numbers = #tpu.dot_dimension_numbers<[1], [0], [0], [1], [0, 0, 1, 1], [], []>} : vector<8x12xf32>, vector<12x256xf32>, vector<8x256xf32> -> vector<8x256xf32>
    %11 = arith.addf %8, %10 : vector<8x256xf32>
    %c0_8 = arith.constant 0 : index
    %c0_9 = arith.constant 0 : index
    %12 = vector.load %arg5[%c0_8, %c0_9] : memref<1x256xf32, #tpu.memory_space<vmem>>, vector<1x256xf32>
    %13 = vector.broadcast %12 : vector<1x256xf32> to vector<8x256xf32>
    %14 = arith.addf %11, %13 : vector<8x256xf32>
    %cst_10 = arith.constant 0.000000e+00 : f32
    %15 = vector.broadcast %cst_10 : f32 to vector<8x256xf32>
    %16 = arith.maximumf %14, %15 : vector<8x256xf32>
    %c0_11 = arith.constant 0 : index
    %c0_12 = arith.constant 0 : index
    %17 = vector.load %arg6[%c0_11, %c0_12] : memref<256x288xf32, #tpu.memory_space<vmem>>, vector<256x288xf32>
    %cst_13 = arith.constant dense<0.000000e+00> : vector<8x288xf32>
    %18 = tpu.matmul %16, %17, %cst_13 {dimension_numbers = #tpu.dot_dimension_numbers<[1], [0], [0], [1], [0, 0, 1, 1], [], []>} : vector<8x256xf32>, vector<256x288xf32>, vector<8x288xf32> -> vector<8x288xf32>
    %c0_14 = arith.constant 0 : index
    %c0_15 = arith.constant 0 : index
    %19 = vector.load %arg7[%c0_14, %c0_15] : memref<1x288xf32, #tpu.memory_space<vmem>>, vector<1x288xf32>
    %20 = vector.broadcast %19 : vector<1x288xf32> to vector<8x288xf32>
    %21 = arith.addf %18, %20 : vector<8x288xf32>
    %c0_16 = arith.constant 0 : index
    %c0_17 = arith.constant 0 : index
    %22 = vector.load %arg8[%c0_16, %c0_17] : memref<8x288xf32, #tpu.memory_space<vmem>>, vector<8x288xf32>
    tpu.vector_store %arg8[%c0_16, %c0_17], %21 {strides = array<i32>} : memref<8x288xf32, #tpu.memory_space<vmem>>, vector<8x288xf32>,
    return
  }
  func.func @transform_0(%arg0: i32) -> (i32, i32) {
    %c0_i32 = arith.constant 0 : i32
    %c0_i32_0 = arith.constant 0 : i32
    return %arg0, %c0_i32 : i32, i32
  }
  func.func @transform_1(%arg0: i32) -> (i32, i32) {
    %c0_i32 = arith.constant 0 : i32
    %c0_i32_0 = arith.constant 0 : i32
    return %arg0, %c0_i32 : i32, i32
  }
  func.func @transform_2(%arg0: i32) -> (i32, i32) {
    %c0_i32 = arith.constant 0 : i32
    %c0_i32_0 = arith.constant 0 : i32
    %c0_i32_1 = arith.constant 0 : i32
    return %c0_i32, %c0_i32_0 : i32, i32
  }
  func.func @transform_3(%arg0: i32) -> (i32, i32) {
    %c0_i32 = arith.constant 0 : i32
    %c0_i32_0 = arith.constant 0 : i32
    %c0_i32_1 = arith.constant 0 : i32
    return %c0_i32, %c0_i32_0 : i32, i32
  }
  func.func @transform_4(%arg0: i32) -> (i32, i32) {
    %c0_i32 = arith.constant 0 : i32
    %c0_i32_0 = arith.constant 0 : i32
    %c0_i32_1 = arith.constant 0 : i32
    return %c0_i32, %c0_i32_0 : i32, i32
  }
  func.func @transform_5(%arg0: i32) -> (i32, i32) {
    %c0_i32 = arith.constant 0 : i32
    %c0_i32_0 = arith.constant 0 : i32
    %c0_i32_1 = arith.constant 0 : i32
    return %c0_i32, %c0_i32_0 : i32, i32
  }
  func.func @transform_6(%arg0: i32) -> (i32, i32) {
    %c0_i32 = arith.constant 0 : i32
    %c0_i32_0 = arith.constant 0 : i32
    %c0_i32_1 = arith.constant 0 : i32
    return %c0_i32, %c0_i32_0 : i32, i32
  }
  func.func @transform_7(%arg0: i32) -> (i32, i32) {
    %c0_i32 = arith.constant 0 : i32
    %c0_i32_0 = arith.constant 0 : i32
    return %arg0, %c0_i32 : i32, i32
  }
}

</mosaic_0001>

<bundles_post_ra>
// kernel: tpu_custom_call.1
= control target key start
LH: loop header
LB: loop body
LE: loop exit
PB: predicated region body
PF: predicated region fallthrough
CT: control target
= control target key end

     0   :  { %vm119_vm0 = vcmask 1043456   ;;  %v580_v3 = vmov 0   ;;  %s1169_s0 = inlined_call_operand.vmem [shape: s32[8,1], index: 0, kind: input, shape index: {}]   ;;  %s1170_s1 = inlined_call_operand.vmem [shape: f32[8,288], index: 1, kind: input, shape index: {}]   ;;  %s1171_s2 = inlined_call_operand.vmem [shape: f32[288,256], index: 2, kind: input, shape index: {}]   ;;  %s1172_s3 = inlined_call_operand.vmem [shape: f32[12,256], index: 3, kind: input, shape index: {}]   ;;  %s1173_s4 = inlined_call_operand.vmem [shape: f32[1,256], index: 4, kind: input, shape index: {}]   ;;  %s1174_s5 = inlined_call_operand.vmem [shape: f32[256,288], index: 5, kind: input, shape index: {}]   ;;  %s1175_s6 = inlined_call_operand.vmem [shape: f32[1,288], index: 6, kind: input, shape index: {}]   ;;  %s1176_s7 = inlined_call_operand.hbm [shape: f32[8,288], index: 7, kind: output, shape index: {}]  }
   0x1   :  { %v32_v0 = vld [vmem:[%s1169_s0] sm:$0xff]  ;;  %v114_v1 = vld [vmem:[%s1172_s3 + $0x18] sm:$0xf]  ;;  %553 = vset.pattern.permute.xlu0 %v580_v3  ;;  %v112_v4 = vld [vmem:[%s1172_s3 + $0x8] sm:$0xff] }
   0x2   :  { %v70_v2 = vld [vmem:[%s1171_s2 + $0xf8] sm:$0xff]  ;;  %546 = vmatpush.msk.msra.mxu2 %vm119_vm0, %v114_v1  ;;  %v69_v5 = vld [vmem:[%s1171_s2 + $0xf0] sm:$0xff]  ;;  %v68_v6 = vld [vmem:[%s1171_s2 + $0xe8] sm:$0xff]  ;;  %34 = vperm.xlu0 %553, %v32_v0  }
   0x3   :  { %230 = vmatpush.msra.mxu1 %v70_v2  ;;  %v101_v7 = vld [vmem:[%s1171_s2 + $0x1f0] sm:$0xff]  ;;  %v67_v8 = vld [vmem:[%s1171_s2 + $0xe0] sm:$0xff]  ;;  %v66_v9 = vld [vmem:[%s1171_s2 + $0xd8] sm:$0xff] }
   0x4   :  { %161 = vmatpush.msra.mxu2 %v112_v4  ;;  %190 = vmatpush.msra.mxu3 %v101_v7  ;;  %v99_v10 = vld [vmem:[%s1171_s2 + $0x1e0] sm:$0xff]  ;;  %v97_v11 = vld [vmem:[%s1171_s2 + $0x1d0] sm:$0xff]  ;;  %v64_v13 = vld [vmem:[%s1171_s2 + $0xc8] sm:$0xff] }
   0x5   :  { %231 = vmatpush.msra.mxu1 %v68_v6  ;;  %v65_v12 = vld [vmem:[%s1171_s2 + $0xd0] sm:$0xff]  ;;  %v95_v14 = vld [vmem:[%s1171_s2 + $0x1c0] sm:$0xff]  ;;  %v62_v16 = vld [vmem:[%s1171_s2 + $0xb8] sm:$0xff] }
   0x6   :  { %170 = vmatpush.msrb.mxu2 %v69_v5  ;;  %191 = vmatpush.msra.mxu3 %v99_v10  ;;  %v63_v15 = vld [vmem:[%s1171_s2 + $0xc0] sm:$0xff]  ;;  %v93_v17 = vld [vmem:[%s1171_s2 + $0x1b0] sm:$0xff]  ;;  %v60_v20 = vld [vmem:[%s1171_s2 + $0xa8] sm:$0xff] }
   0x7   :  { %232 = vmatpush.msra.mxu1 %v66_v9  ;;  %v113_v18 = vld [vmem:[%s1172_s3 + $0x10] sm:$0xf]  ;;  %v111_v21 = vld [vmem:[%s1172_s3] sm:$0xff]  ;;  %v58_v25 = vld [vmem:[%s1171_s2 + $0x98] sm:$0xff] }
   0x8   :  { %171 = vmatpush.msrb.mxu2 %v67_v8  ;;  %192 = vmatpush.msra.mxu3 %v97_v11  ;;  %v61_v19 = vld [vmem:[%s1171_s2 + $0xb0] sm:$0xff]  ;;  %v91_v22 = vld [vmem:[%s1171_s2 + $0x1a0] sm:$0xff]  ;;  %v56_v29 = vld [vmem:[%s1171_s2 + $0x88] sm:$0xff] }
   0x9   :  { %233 = vmatpush.msra.mxu1 %v64_v13  ;;  %544 = vmatpush.msk.msra.mxu0 %vm119_vm0, %v113_v18  ;;  %v109_v23 = vld [vmem:[%s1171_s2 + $0x230] sm:$0xff]  ;;  %v59_v24 = vld [vmem:[%s1171_s2 + $0xa0] sm:$0xff] }
   0xa   :  { %172 = vmatpush.msrb.mxu2 %v65_v12  ;;  %193 = vmatpush.msra.mxu3 %v95_v14  ;;  %v89_v26 = vld [vmem:[%s1171_s2 + $0x190] sm:$0xff]  ;;  %v107_v27 = vld [vmem:[%s1171_s2 + $0x220] sm:$0xff] }
   0xb   :  { %234 = vmatpush.msra.mxu1 %v62_v16  ;;  %141 = vmatpush.msra.mxu0 %v111_v21  ;;  %v57_v28 = vld [vmem:[%s1171_s2 + $0x90] sm:$0xff] }
   0xc   :  { %173 = vmatpush.msrb.mxu2 %v63_v15  ;;  %194 = vmatpush.msra.mxu3 %v93_v17 }
   0xd   :  { %235 = vmatpush.msra.mxu1 %v60_v20  ;;  %222 = vmatpush.msrb.mxu0 %v109_v23 }
   0xe   :  { %174 = vmatpush.msrb.mxu2 %v61_v19  ;;  %195 = vmatpush.msra.mxu3 %v91_v22 }
   0xf   :  { %12 = vsyncpa [#allocation3], 0  ;;  %236 = vmatpush.msra.mxu1 %v58_v25  ;;  %v87_v30 = vld [vmem:[%s1171_s2 + $0x180] sm:$0xff]  ;;  %v105_v31 = vld [vmem:[%s1171_s2 + $0x210] sm:$0xff]  ;;  %223 = vmatpush.msrb.mxu0 %v107_v27  ;;  %v30_v60 = vlaneseq  ;;  %vm115_vm1 = vcmask 97280   ;;  %v581_v1 = vmov 0.0  }
  0x10   :  { %175 = vmatpush.msrb.mxu2 %v59_v24  ;;  %v55_v32 = vld [vmem:[%s1171_s2 + $0x80] sm:$0xff]  ;;  %196 = vmatpush.msra.mxu3 %v89_v26  ;;  %v54_v33 = vld [vmem:[%s1171_s2 + $0x78] sm:$0xff]  ;;  %v85_v34 = vld [vmem:[%s1171_s2 + $0x170] sm:$0xff]  ;;  %vm166_vm3 = vcmask 261120   ;;  %s582_s16 = smov [#allocation2]  }
  0x11   :  { %237 = vmatpush.msra.mxu1 %v56_v29  ;;  %v53_v35 = vld [vmem:[%s1171_s2 + $0x70] sm:$0xff]  ;;  %v52_v36 = vld [vmem:[%s1171_s2 + $0x68] sm:$0xff]  ;;  %224 = vmatpush.msrb.mxu0 %v105_v31  ;;  %v83_v37 = vld [vmem:[%s1171_s2 + $0x160] sm:$0xff]  ;;  %v31_v61 = vand.u32 127, %v30_v60  ;;  %s532_s17 = sshll.u32 %s582_s16, 4  ;;  %s533_s17 = int_to_ptr.vmem [resolvable:$true] %s532_s17 }
  0x12   :  { %176 = vmatpush.msrb.mxu2 %v57_v28  ;;  %197 = vmatpush.msra.mxu3 %v87_v30  ;;  %v51_v38 = vld [vmem:[%s1171_s2 + $0x60] sm:$0xff]  ;;  %v50_v39 = vld [vmem:[%s1171_s2 + $0x58] sm:$0xff]  ;;  %v49_v40 = vld [vmem:[%s1171_s2 + $0x50] sm:$0xff] }
  0x13   :  { %238 = vmatpush.msra.mxu1 %v54_v33  ;;  %v48_v41 = vld [vmem:[%s1171_s2 + $0x48] sm:$0xff]  ;;  %v47_v42 = vld [vmem:[%s1171_s2 + $0x40] sm:$0xff]  ;;  %v81_v43 = vld [vmem:[%s1171_s2 + $0x150] sm:$0xff] }
  0x14   :  { %177 = vmatpush.msrb.mxu2 %v55_v32  ;;  %198 = vmatpush.msra.mxu3 %v85_v34  ;;  %v103_v44 = vld [vmem:[%s1171_s2 + $0x200] sm:$0xff]  ;;  %v46_v45 = vld [vmem:[%s1171_s2 + $0x38] sm:$0xff]  ;;  %v45_v46 = vld [vmem:[%s1171_s2 + $0x30] sm:$0xff] }
  0x15   :  { %239 = vmatpush.msra.mxu1 %v52_v36  ;;  %225 = vmatpush.msrb.mxu0 %v103_v44  ;;  %v79_v47 = vld [vmem:[%s1171_s2 + $0x140] sm:$0xff]  ;;  %v44_v48 = vld [vmem:[%s1171_s2 + $0x28] sm:$0xff]  ;;  %v77_v50 = vld [vmem:[%s1171_s2 + $0x130] sm:$0xff] }
  0x16   :  { %178 = vmatpush.msrb.mxu2 %v53_v35  ;;  %199 = vmatpush.msra.mxu3 %v83_v37  ;;  %v43_v49 = vld [vmem:[%s1171_s2 + $0x20] sm:$0xff]  ;;  %v42_v51 = vld [vmem:[%s1171_s2 + $0x18] sm:$0xff]  ;;  %v41_v52 = vld [vmem:[%s1171_s2 + $0x10] sm:$0xff] }
  0x17   :  { %240 = vmatpush.msra.mxu1 %v50_v39  ;;  %v75_v53 = vld [vmem:[%s1171_s2 + $0x120] sm:$0xff]  ;;  %v40_v54 = vld [vmem:[%s1171_s2 + $0x8] sm:$0xff]  ;;  %v73_v57 = vld [vmem:[%s1171_s2 + $0x110] sm:$0xff] }
  0x18   :  { %179 = vmatpush.msrb.mxu2 %v51_v38  ;;  %200 = vmatpush.msra.mxu3 %v81_v43  ;;  %v27_v55 = vld [vmem:[%s1170_s1] sm:$0xff]  ;;  %v802_v59 = vld [vmem:[%s1170_s1 + $0x8] sm:$0xff]  ;;  %v102_v63 = vld [vmem:[%s1171_s2 + $0x1f8] sm:$0xff] }
  0x19   :  { %241 = vmatpush.msra.mxu1 %v48_v41  ;;  %v39_v56 = vld [vmem:[%s1171_s2] sm:$0xff]  ;;  %v110_v0 = vld [vmem:[%s1171_s2 + $0x238] sm:$0xff]  ;;  %v100_v3 = vld [vmem:[%s1171_s2 + $0x1e8] sm:$0xff] }
  0x1a   :  { %180 = vmatpush.msrb.mxu2 %v49_v40  ;;  %201 = vmatpush.msra.mxu3 %v79_v47  ;;  %v71_v58 = vld [vmem:[%s1171_s2 + $0x100] sm:$0xff]  ;;  %v108_v4 = vld [vmem:[%s1171_s2 + $0x228] sm:$0xff]  ;;  %v342_v6 = vld [vmem:[%s1174_s5 + $0x150] sm:$0xff] }
  0x1b   :  { %242 = vmatpush.msra.mxu1 %v46_v45  ;;  %v345_v5 = vld [vmem:[%s1174_s5 + $0x168] sm:$0xff]  ;;  %v98_v7 = vld [vmem:[%s1171_s2 + $0x1d8] sm:$0xff]  ;;  %v390_v11 = vld [vmem:[%s1174_s5 + $0x2d0] sm:$0xff] }
  0x1c   :  { %181 = vmatpush.msrb.mxu2 %v47_v42  ;;  %202 = vmatpush.msra.mxu3 %v77_v50  ;;  %v106_v8 = vld [vmem:[%s1171_s2 + $0x218] sm:$0xff]  ;;  %v393_v9 = vld [vmem:[%s1174_s5 + $0x2e8] sm:$0xff]  ;;  %v29_v14 = vld [vmem:[%s1170_s1 + $0x10] sm:$0xff] }
  0x1d   :  { %243 = vmatpush.msra.mxu1 %v44_v48  ;;  %v339_v10 = vld [vmem:[%s1174_s5 + $0x138] sm:$0xff]  ;;  %v96_v12 = vld [vmem:[%s1171_s2 + $0x1c8] sm:$0xff]  ;;  %v336_v16 = vld [vmem:[%s1174_s5 + $0x120] sm:$0xff] }
  0x1e   :  { %182 = vmatpush.msrb.mxu2 %v45_v46  ;;  %203 = vmatpush.msra.mxu3 %v75_v53  ;;  %v104_v13 = vld [vmem:[%s1171_s2 + $0x208] sm:$0xff]  ;;  %v94_v15 = vld [vmem:[%s1171_s2 + $0x1b8] sm:$0xff]  ;;  %v346_v18 = vld [vmem:[%s1174_s5 + $0x170] sm:$0xff] }
  0x1f   :  { %244 = vmatpush.msra.mxu1 %v42_v51  ;;  %v387_v17 = vld [vmem:[%s1174_s5 + $0x2b8] sm:$0xff]  ;;  %v92_v19 = vld [vmem:[%s1171_s2 + $0x1a8] sm:$0xff]  ;;  %v384_v21 = vld [vmem:[%s1174_s5 + $0x2a0] sm:$0xff] }
  0x20   :  { %183 = vmatpush.msrb.mxu2 %v43_v49  ;;  %204 = vmatpush.msra.mxu3 %v73_v57  ;;  %v333_v20 = vld [vmem:[%s1174_s5 + $0x108] sm:$0xff]  ;;  %v343_v22 = vld [vmem:[%s1174_s5 + $0x158] sm:$0xff]  ;;  %v330_v24 = vld [vmem:[%s1174_s5 + $0xf0] sm:$0xff] }
  0x21   :  { %245 = vmatpush.msra.mxu1 %v40_v54  ;;  %v90_v23 = vld [vmem:[%s1171_s2 + $0x198] sm:$0xff]  ;;  %v381_v25 = vld [vmem:[%s1174_s5 + $0x288] sm:$0xff]  ;;  %v340_v26 = vld [vmem:[%s1174_s5 + $0x140] sm:$0xff] }
  0x22   :  { %184 = vmatpush.msrb.mxu2 %v41_v52  ;;  %246 = vmatmul.f32.vlgmr.msra.gmra.mxu1 %v27_v55  ;;  %v88_v27 = vld [vmem:[%s1171_s2 + $0x188] sm:$0xff]  ;;  %v327_v28 = vld [vmem:[%s1174_s5 + $0xd8] sm:$0xff]  ;;  %v378_v29 = vld [vmem:[%s1174_s5 + $0x270] sm:$0xff] }
  0x23   :  { %205 = vmatpush.msra.mxu3 %v71_v58  ;;  %424 = vmatpush.msrb.mxu1 %v393_v9  ;;  %v86_v30 = vld [vmem:[%s1171_s2 + $0x178] sm:$0xff]  ;;  %v324_v31 = vld [vmem:[%s1174_s5 + $0xc0] sm:$0xff]  ;;  %v84_v33 = vld [vmem:[%s1171_s2 + $0x168] sm:$0xff] }
  0x24   :  { %185 = vmatpush.msrb.mxu2 %v39_v56  ;;  %206 = vmatmul.f32.vlgmr.msra.gmra.mxu3 %v802_v59  ;;  %v375_v32 = vld [vmem:[%s1174_s5 + $0x258] sm:$0xff]  ;;  %v321_v34 = vld [vmem:[%s1174_s5 + $0xa8] sm:$0xff]  ;;  %v318_v36 = vld [vmem:[%s1174_s5 + $0x90] sm:$0xff] }
  0x25   :  { %404 = vmatpush.msrb.mxu3 %v345_v5  ;;  %425 = vmatpush.msrb.mxu1 %v390_v11  ;;  %v82_v35 = vld [vmem:[%s1171_s2 + $0x158] sm:$0xff]  ;;  %v80_v37 = vld [vmem:[%s1171_s2 + $0x148] sm:$0xff]  ;;  %v312_v40 = vld [vmem:[%s1174_s5 + $0x60] sm:$0xff] }
  0x26   :  { %v315_v38 = vld [vmem:[%s1174_s5 + $0x78] sm:$0xff]  ;;  %v76_v41 = vld [vmem:[%s1171_s2 + $0x128] sm:$0xff]  ;;  %v306_v44 = vld [vmem:[%s1174_s5 + $0x30] sm:$0xff] }
  0x27   :  { %405 = vmatpush.msrb.mxu3 %v342_v6  ;;  %426 = vmatpush.msrb.mxu1 %v387_v17  ;;  %v78_v39 = vld [vmem:[%s1171_s2 + $0x138] sm:$0xff]  ;;  %v309_v42 = vld [vmem:[%s1174_s5 + $0x48] sm:$0xff]  ;;  %v372_v47 = vld [vmem:[%s1174_s5 + $0x240] sm:$0xff] }
  0x28   :  { %v74_v43 = vld [vmem:[%s1171_s2 + $0x118] sm:$0xff]  ;;  %v72_v45 = vld [vmem:[%s1171_s2 + $0x108] sm:$0xff]  ;;  %v300_v49 = vld [vmem:[%s1174_s5] sm:$0xff] }
  0x29   :  { %406 = vmatpush.msrb.mxu3 %v339_v10  ;;  %427 = vmatpush.msrb.mxu1 %v384_v21  ;;  %v303_v46 = vld [vmem:[%s1174_s5 + $0x18] sm:$0xff]  ;;  %v337_v48 = vld [vmem:[%s1174_s5 + $0x128] sm:$0xff]  ;;  %v334_v51 = vld [vmem:[%s1174_s5 + $0x110] sm:$0xff] }
  0x2a   :  { %v369_v50 = vld [vmem:[%s1174_s5 + $0x228] sm:$0xff]  ;;  %v347_v52 = vld [vmem:[%s1174_s5 + $0x178] sm:$0xff]  ;;  %v366_v53 = vld [vmem:[%s1174_s5 + $0x210] sm:$0xff] }
  0x2b   :  { %407 = vmatpush.msrb.mxu3 %v336_v16  ;;  %428 = vmatpush.msrb.mxu1 %v381_v25  ;;  %v331_v54 = vld [vmem:[%s1174_s5 + $0xf8] sm:$0xff]  ;;  %v328_v57 = vld [vmem:[%s1174_s5 + $0xe0] sm:$0xff]  ;;  %v341_v58 = vld [vmem:[%s1174_s5 + $0x148] sm:$0xff] }
  0x2c   :  { %v363_v56 = vld [vmem:[%s1174_s5 + $0x1f8] sm:$0xff]  ;;  %v325_v60 = vld [vmem:[%s1174_s5 + $0xc8] sm:$0xff]  ;;  %v332_v5 = vld [vmem:[%s1174_s5 + $0x100] sm:$0xff] }
  0x2d   :  { %408 = vmatpush.msrb.mxu3 %v333_v20  ;;  %429 = vmatpush.msrb.mxu1 %v378_v29  ;;  %v388_v6 = vld [vmem:[%s1174_s5 + $0x2c0] sm:$0xff]  ;;  %v329_v9 = vld [vmem:[%s1174_s5 + $0xe8] sm:$0xff]  ;;  %v310_v16 = vld [vmem:[%s1174_s5 + $0x50] sm:$0xff] }
  0x2e   :  { %v385_v10 = vld [vmem:[%s1174_s5 + $0x2a8] sm:$0xff]  ;;  %v348_v11 = vld [vmem:[%s1174_s5 + $0x180] sm:$0xff]  ;;  %v323_v17 = vld [vmem:[%s1174_s5 + $0xb8] sm:$0xff] }
  0x2f   :  { %409 = vmatpush.msrb.mxu3 %v330_v24  ;;  %430 = vmatpush.msrb.mxu1 %v375_v32  ;;  %v307_v20 = vld [vmem:[%s1174_s5 + $0x38] sm:$0xff]  ;;  %v320_v21 = vld [vmem:[%s1174_s5 + $0xa0] sm:$0xff]  ;;  %v317_v25 = vld [vmem:[%s1174_s5 + $0x88] sm:$0xff] }
  0x30   :  { %v304_v24 = vld [vmem:[%s1174_s5 + $0x20] sm:$0xff]  ;;  %v314_v29 = vld [vmem:[%s1174_s5 + $0x70] sm:$0xff]  ;;  %v311_v32 = vld [vmem:[%s1174_s5 + $0x58] sm:$0xff] }
  0x31   :  { %410 = vmatpush.msrb.mxu3 %v327_v28  ;;  %431 = vmatpush.msrb.mxu1 %v372_v47  ;;  %v301_v28 = vld [vmem:[%s1174_s5 + $0x8] sm:$0xff] }
  0x32   :  { %v365_v47 = vld [vmem:[%s1174_s5 + $0x208] sm:$0xff] }
  0x33   :  { %411 = vmatpush.msrb.mxu3 %v324_v31  ;;  %432 = vmatpush.msrb.mxu1 %v369_v50  ;;  %v383_v31 = vld [vmem:[%s1174_s5 + $0x298] sm:$0xff]  ;;  %v362_v50 = vld [vmem:[%s1174_s5 + $0x1f0] sm:$0xff] }
  0x35   :  { %412 = vmatpush.msrb.mxu3 %v321_v34  ;;  %433 = vmatpush.msrb.mxu1 %v366_v53  ;;  %v380_v34 = vld [vmem:[%s1174_s5 + $0x280] sm:$0xff] }
  0x36   :  { %v356_v53 = vld [vmem:[%s1174_s5 + $0x1c0] sm:$0xff] }
  0x37   :  { %413 = vmatpush.msrb.mxu3 %v318_v36  ;;  %434 = vmatpush.msrb.mxu1 %v363_v56  ;;  %v364_v36 = vld [vmem:[%s1174_s5 + $0x200] sm:$0xff] }
  0x39   :  { %414 = vmatpush.msrb.mxu3 %v315_v38  ;;  %v305_v38 = vld [vmem:[%s1174_s5 + $0x28] sm:$0xff] }
  0x3b   :  { %415 = vmatpush.msrb.mxu3 %v312_v40  ;;  %v374_v40 = vld [vmem:[%s1174_s5 + $0x250] sm:$0xff] }
  0x3d   :  { %416 = vmatpush.msrb.mxu3 %v309_v42  ;;  %v358_v42 = vld [vmem:[%s1174_s5 + $0x1d0] sm:$0xff] }
  0x3f   :  { %417 = vmatpush.msrb.mxu3 %v306_v44  ;;  %v355_v44 = vld [vmem:[%s1174_s5 + $0x1b8] sm:$0xff] }
  0x41   :  { %418 = vmatpush.msrb.mxu3 %v303_v46  ;;  %v352_v46 = vld [vmem:[%s1174_s5 + $0x1a0] sm:$0xff] }
  0x43   :  { %419 = vmatpush.msrb.mxu3 %v300_v49  ;;  %v349_v49 = vld [vmem:[%s1174_s5 + $0x188] sm:$0xff] }
  0x45   :  { %484 = vmatpush.msra.mxu3 %v347_v52  ;;  %v359_v52 = vld [vmem:[%s1174_s5 + $0x1d8] sm:$0xff] }
  0x74   :  { %v35_v62 = vpop.permute.xlu0 %34 }
  0x75   :  { %vm36_vm2 = vcmp.eq.s32.totalorder %v35_v62, %v31_v61  ;;  %v338_v61 = vld [vmem:[%s1174_s5 + $0x130] sm:$0xff] }
  0x76   :  { %v543_v2 = vsel %vm36_vm2, 1.0, %v581_v1  ;;  %v394_v62 = vld [vmem:[%s1174_s5 + $0x2f0] sm:$0xff]  ;;  %v335_v1 = vld [vmem:[%s1174_s5 + $0x118] sm:$0xff] }
  0x77   :  { %545 = vmatmul.msk.f32.vlgmr.msra.gmra.mxu0 %vm115_vm1, %v543_v2  ;;  %547 = vmatmul.msk.f32.vlgmr.msra.gmra.mxu2 %vm115_vm1, %v543_v2  ;;  %v391_v2 = vld [vmem:[%s1174_s5 + $0x2d8] sm:$0xff] }
  0x78   :  { %250 = vmatpush.msra.mxu0 %v102_v63  ;;  %282 = vmatpush.msra.mxu2 %v110_v0  ;;  %v357_v63 = vld [vmem:[%s1174_s5 + $0x1c8] sm:$0xff]  ;;  %v322_v0 = vld [vmem:[%s1174_s5 + $0xb0] sm:$0xff] }
  0x7a   :  { %251 = vmatpush.msra.mxu0 %v100_v3  ;;  %283 = vmatpush.msra.mxu2 %v108_v4  ;;  %v354_v3 = vld [vmem:[%s1174_s5 + $0x1b0] sm:$0xff]  ;;  %v319_v4 = vld [vmem:[%s1174_s5 + $0x98] sm:$0xff] }
  0x7c   :  { %252 = vmatpush.msra.mxu0 %v98_v7  ;;  %284 = vmatpush.msra.mxu2 %v106_v8  ;;  %v351_v7 = vld [vmem:[%s1174_s5 + $0x198] sm:$0xff]  ;;  %v316_v8 = vld [vmem:[%s1174_s5 + $0x80] sm:$0xff] }
  0x7e   :  { %253 = vmatpush.msra.mxu0 %v96_v12  ;;  %285 = vmatpush.msra.mxu2 %v104_v13  ;;  %v313_v12 = vld [vmem:[%s1174_s5 + $0x68] sm:$0xff]  ;;  %v326_v13 = vld [vmem:[%s1174_s5 + $0xd0] sm:$0xff] }
  0x7f   :  { %186 = vmatmul.f32.vlgmr.msrb.gmra.mxu2 %v27_v55  ;;  %548 = vmatmul.msk.f32.vlgmr.msrb.gmra.mxu0 %vm166_vm3, %v29_v14  ;;  %v344_v55 = vld [vmem:[%s1174_s5 + $0x160] sm:$0xff] }
  0x80   :  { %254 = vmatpush.msra.mxu0 %v94_v15  ;;  %444 = vmatpush.msrb.mxu2 %v346_v18  ;;  %v395_v15 = vld [vmem:[%s1174_s5 + $0x2f8] sm:$0xff] }
  0x81   :  { %485 = vmatpush.msra.mxu3 %v344_v55  ;;  %v379_v18 = vld [vmem:[%s1174_s5 + $0x278] sm:$0xff] }
  0x82   :  { %255 = vmatpush.msra.mxu0 %v92_v19  ;;  %445 = vmatpush.msrb.mxu2 %v343_v22  ;;  %v392_v19 = vld [vmem:[%s1174_s5 + $0x2e0] sm:$0xff] }
  0x83   :  { %486 = vmatpush.msra.mxu3 %v341_v58  ;;  %v376_v22 = vld [vmem:[%s1174_s5 + $0x260] sm:$0xff]  ;;  %v350_v58 = vld [vmem:[%s1174_s5 + $0x190] sm:$0xff] }
  0x84   :  { %256 = vmatpush.msra.mxu0 %v90_v23  ;;  %446 = vmatpush.msrb.mxu2 %v340_v26  ;;  %v389_v23 = vld [vmem:[%s1174_s5 + $0x2c8] sm:$0xff] }
  0x85   :  { %487 = vmatpush.msra.mxu3 %v338_v61  ;;  %v373_v26 = vld [vmem:[%s1174_s5 + $0x248] sm:$0xff] }
  0x86   :  { %257 = vmatpush.msra.mxu0 %v88_v27  ;;  %447 = vmatpush.msrb.mxu2 %v337_v48  ;;  %v386_v27 = vld [vmem:[%s1174_s5 + $0x2b0] sm:$0xff] }
  0x87   :  { %549 = vmatmul.msk.f32.vlgmr.msra.gmra.mxu2 %vm166_vm3, %v29_v14  ;;  %488 = vmatpush.msra.mxu3 %v335_v1  ;;  %v382_v14 = vld [vmem:[%s1174_s5 + $0x290] sm:$0xff] }
  0x88   :  { %258 = vmatpush.msra.mxu0 %v86_v30  ;;  %448 = vmatpush.msrb.mxu2 %v334_v51  ;;  %v370_v30 = vld [vmem:[%s1174_s5 + $0x230] sm:$0xff] }
  0x89   :  { %489 = vmatpush.msra.mxu3 %v332_v5 }
  0x8a   :  { %259 = vmatpush.msra.mxu0 %v84_v33  ;;  %449 = vmatpush.msrb.mxu2 %v331_v54  ;;  %v367_v33 = vld [vmem:[%s1174_s5 + $0x218] sm:$0xff]  ;;  %v353_v54 = vld [vmem:[%s1174_s5 + $0x1a8] sm:$0xff] }
  0x8b   :  { %490 = vmatpush.msra.mxu3 %v329_v9 }
  0x8c   :  { %260 = vmatpush.msra.mxu0 %v82_v35  ;;  %450 = vmatpush.msrb.mxu2 %v328_v57  ;;  %v308_v35 = vld [vmem:[%s1174_s5 + $0x40] sm:$0xff] }
  0x8d   :  { %491 = vmatpush.msra.mxu3 %v326_v13  ;;  %v290_v57 = vld [vmem:[%s1173_s4] sm:$0x3] }
  0x8e   :  { %261 = vmatpush.msra.mxu0 %v80_v37  ;;  %451 = vmatpush.msrb.mxu2 %v325_v60  ;;  %v377_v37 = vld [vmem:[%s1174_s5 + $0x268] sm:$0xff] }
  0x8f   :  { %492 = vmatpush.msra.mxu3 %v323_v17 }
  0x90   :  { %262 = vmatpush.msra.mxu0 %v78_v39  ;;  %452 = vmatpush.msrb.mxu2 %v322_v0  ;;  %v361_v39 = vld [vmem:[%s1174_s5 + $0x1e8] sm:$0xff] }
  0x91   :  { %493 = vmatpush.msra.mxu3 %v320_v21 }
  0x92   :  { %263 = vmatpush.msra.mxu0 %v76_v41  ;;  %453 = vmatpush.msrb.mxu2 %v319_v4  ;;  %v302_v41 = vld [vmem:[%s1174_s5 + $0x10] sm:$0xff] }
  0x93   :  { %494 = vmatpush.msra.mxu3 %v317_v25 }
  0x94   :  { %264 = vmatpush.msra.mxu0 %v74_v43  ;;  %454 = vmatpush.msrb.mxu2 %v316_v8  ;;  %v371_v43 = vld [vmem:[%s1174_s5 + $0x238] sm:$0xff] }
  0x95   :  { %495 = vmatpush.msra.mxu3 %v314_v29 }
  0x96   :  { %265 = vmatpush.msra.mxu0 %v72_v45  ;;  %455 = vmatpush.msrb.mxu2 %v313_v12  ;;  %v368_v45 = vld [vmem:[%s1174_s5 + $0x220] sm:$0xff] }
  0x97   :  { %266 = vmatmul.f32.vlgmr.msra.gmra.mxu0 %v802_v59  ;;  %v360_v59 = vld [vmem:[%s1174_s5 + $0x1e0] sm:$0xff]  ;;  %496 = vmatpush.msra.mxu3 %v311_v32 }
  0x98   :  { %435 = vmatpush.msrb.mxu1 %v360_v59  ;;  %464 = vmatpush.msrb.mxu0 %v394_v62  ;;  %v292_v62 = vperm.slane %v290_v57, 0 }
  0x99   :  { %456 = vmatpush.msrb.mxu2 %v310_v16  ;;  %497 = vmatpush.msra.mxu3 %v308_v35 }
  0x9a   :  { %436 = vmatpush.msrb.mxu1 %v357_v63  ;;  %465 = vmatpush.msrb.mxu0 %v391_v2 }
  0x9b   :  { %457 = vmatpush.msrb.mxu2 %v307_v20  ;;  %498 = vmatpush.msra.mxu3 %v305_v38 }
  0x9c   :  { %437 = vmatpush.msrb.mxu1 %v354_v3  ;;  %466 = vmatpush.msrb.mxu0 %v388_v6 }
  0x9d   :  { %458 = vmatpush.msrb.mxu2 %v304_v24  ;;  %499 = vmatpush.msra.mxu3 %v302_v41 }
  0x9e   :  { %438 = vmatpush.msrb.mxu1 %v351_v7  ;;  %467 = vmatpush.msrb.mxu0 %v385_v10  ;;  %v293_v7 = vperm.slane %v290_v57, 1 }
  0x9f   :  { %459 = vmatpush.msrb.mxu2 %v301_v28  ;;  %v247_v2 = vpop.f32.mrf.mxu1 }
  0xa0   :  { %439 = vmatpush.msrb.mxu1 %v348_v11  ;;  %468 = vmatpush.msrb.mxu0 %v382_v14  ;;  %v396_v11 = vld [vmem:[%s1175_s6] sm:$0x7]  ;;  %s534_s6 = sshll.u32 %s1176_s7, 4  ;;  %s535_s6 = int_to_ptr.hbm [resolvable:$true] %s534_s6 }
  0xa1   :  { %v398_v13 = vperm.slane %v396_v11, 0  ;;  %v399_v14 = vperm.slane %v396_v11, 1 }
  0xa2   :  { %504 = vmatpush.msra.mxu1 %v395_v15  ;;  %469 = vmatpush.msrb.mxu0 %v379_v18 }
  0xa4   :  { %505 = vmatpush.msra.mxu1 %v392_v19  ;;  %470 = vmatpush.msrb.mxu0 %v376_v22  ;;  %v400_v22 = vperm.slane %v396_v11, 2 }
  0xa6   :  { %506 = vmatpush.msra.mxu1 %v389_v23  ;;  %471 = vmatpush.msrb.mxu0 %v373_v26 }
  0xa7   :  { %v207_v56 = vpop.f32.mrf.mxu3 }
  0xa8   :  { %507 = vmatpush.msra.mxu1 %v386_v27  ;;  %472 = vmatpush.msrb.mxu0 %v370_v30 }
  0xaa   :  { %508 = vmatpush.msra.mxu1 %v383_v31  ;;  %473 = vmatpush.msrb.mxu0 %v367_v33 }
  0xac   :  { %509 = vmatpush.msra.mxu1 %v380_v34  ;;  %474 = vmatpush.msrb.mxu0 %v364_v36 }
  0xae   :  { %510 = vmatpush.msra.mxu1 %v377_v37  ;;  %475 = vmatpush.msrb.mxu0 %v361_v39 }
  0xb0   :  { %511 = vmatpush.msra.mxu1 %v374_v40  ;;  %476 = vmatpush.msrb.mxu0 %v358_v42 }
  0xb2   :  { %512 = vmatpush.msra.mxu1 %v371_v43  ;;  %477 = vmatpush.msrb.mxu0 %v355_v44 }
  0xb4   :  { %513 = vmatpush.msra.mxu1 %v368_v45  ;;  %478 = vmatpush.msrb.mxu0 %v352_v46 }
  0xb6   :  { %514 = vmatpush.msra.mxu1 %v365_v47  ;;  %479 = vmatpush.msrb.mxu0 %v349_v49 }
  0xb8   :  { %515 = vmatpush.msra.mxu1 %v362_v50 }
  0xba   :  { %516 = vmatpush.msra.mxu1 %v359_v52 }
  0xbc   :  { %517 = vmatpush.msra.mxu1 %v356_v53 }
  0xbe   :  { %518 = vmatpush.msra.mxu1 %v353_v54 }
  0xc0   :  { %519 = vmatpush.msra.mxu1 %v350_v58 }
  0xf4   :  { %v143_v51 = vpop.f32.mrf.mxu0 }
  0xfa   :  { %v163_v48 = vpop.f32.mrf.mxu2 }
  0xfb   :  { %v248_v3 = vadd.f32 %v247_v2, %v163_v48 }
  0xfc   :  { %v227_v60 = vpop.f32.mrf.mxu0 }
 0x102   :  { %v187_v55 = vpop.f32.mrf.mxu2 }
 0x103   :  { %v188_v59 = vadd.f32 %v187_v55, %v143_v51 }
 0x105   :  { %v208_v61 = vadd.f32 %v207_v56, %v188_v59 }
 0x107   :  { %v228_v63 = vadd.f32 %v227_v60, %v208_v61 }
 0x109   :  { %v296_v0 = vadd.f32 %v292_v62, %v228_v63 }
 0x10a   :  { %v287_v5 = vpop.f32.mrf.mxu2 }
 0x10b   :  { %v298_v1 = vmax.f32 %v296_v0, 0.0 }
 0x10d   :  { %420 = vmatmul.f32.vlgmr.msrb.gmra.mxu3 %v298_v1  ;;  %460 = vmatmul.f32.vlgmr.msrb.gmra.mxu2 %v298_v1 }
 0x114   :  { %v267_v4 = vpop.f32.mrf.mxu0 }
 0x115   :  { %v268_v6 = vadd.f32 %v267_v4, %v248_v3  ;;  %500 = vmatmul.f32.vlgmr.msra.gmra.mxu3 %v298_v1 }
 0x117   :  { %v288_v8 = vadd.f32 %v287_v5, %v268_v6 }
 0x119   :  { %v297_v9 = vadd.f32 %v293_v7, %v288_v8 }
 0x11b   :  { %v299_v10 = vmax.f32 %v297_v9, 0.0 }
 0x11d   :  { %440 = vmatmul.f32.vlgmr.msrb.gmra.mxu1 %v299_v10  ;;  %480 = vmatmul.f32.vlgmr.msrb.gmra.mxu0 %v299_v10 }
 0x125   :  { %520 = vmatmul.f32.vlgmr.msra.gmra.mxu1 %v299_v10 }
 0x190   :  { %v421_v12 = vpop.f32.mrf.mxu3  ;;  %v461_v15 = vpop.f32.mrf.mxu2 }
 0x191   :  { %v422_v16 = vadd.f32 %v421_v12, %v398_v13  ;;  %v462_v17 = vadd.f32 %v461_v15, %v399_v14 }
 0x198   :  { %v501_v23 = vpop.f32.mrf.mxu3 }
 0x199   :  { %v502_v24 = vadd.f32 %v501_v23, %v400_v22 }
 0x19a   :  { %v441_v18 = vpop.f32.mrf.mxu1  ;;  %v481_v19 = vpop.f32.mrf.mxu0 }
 0x19b   :  { %v442_v20 = vadd.f32 %v441_v18, %v422_v16  ;;  %v482_v21 = vadd.f32 %v481_v19, %v462_v17 }
 0x19d   :  { %524 = vst [vmem:[#allocation2] sm:$0xff] %v442_v20 }
 0x19e   :  { %525 = vst [vmem:[#allocation2 + $0x8] sm:$0xff] %v482_v21 }
 0x1a2   :  { %v521_v25 = vpop.f32.mrf.mxu1 }
 0x1a3   :  { %v522_v26 = vadd.f32 %v521_v25, %v502_v24 }
 0x1a5   :  { %526 = vst.msk [vmem:[#allocation2 + $0x10] sm:$0xff] %vm166_vm3, %v522_v26 }
 0x1a6   :  { %537 = dma.vmem_to_hbm [thread:$0]  %s533_s17, 384, %s535_s6, [#allocation3]  }
 0x1a7   :  { %578 = dma.done.wait [#allocation3], 384  }
 0x1a8   :  { %579 = vsyncadd [#allocation3], 4294966912 }
 0x1a9   :  { %542 = vsyncpa [#allocation3], 1 }

</bundles_post_ra>
